<compile_context>
chip_gen: v7x
topology: tpu7x:2x2x1
jax: 0.10.0
libtpu: 0.0.40
codegen_flags: <defaults>
</compile_context>

<pallas_src>
import jax
import jax.numpy as jnp
from jax import lax
from jax.experimental import pallas as pl
from jax.experimental.pallas import tpu as pltpu


def _logreg_kernel(x_ref, w_ref, b_ref, out_ref):
    x = x_ref[...]          # (TM, D) f32 batch tile (streamed)
    w = w_ref[...]          # (1, D)  f32 weight row (resident)
    # (1, D) . (TM, D) contracting on D -> (1, TM): lane-dense logits.
    z = lax.dot_general(
        w, x, (((1,), (1,)), ((), ())), preferred_element_type=jnp.float32
    )
    z = z + b_ref[...]      # (1, 1) broadcast over lanes
    out_ref[...] = jax.nn.sigmoid(z).astype(out_ref.dtype)


def _round_up(n, m):
    return ((n + m - 1) // m) * m


def _select_tiles(B, D, target_tile_bytes):
    """Pick (TM, num_tiles) from a VMEM byte budget for one x tile."""
    lane_d = max(D, 128)                    # D < 128 is lane-padded to 128 in VMEM
    bytes_per_row = 4 * lane_d
    tm = max(128, (target_tile_bytes // bytes_per_row) // 128 * 128)
    if tm >= 512:
        tm = (tm // 512) * 512
    # TODO(synk): for very wide D (even a 128-row tile blows the VMEM budget),
    # add a second "arbitrary" grid axis over D with an f32 (1, TM) accumulator
    # (init/finalize via pl.when, sigmoid only on the last K step).
    if B > tm:
        return tm, pl.cdiv(B, tm)
    if B >= 4096:
        # >= 2 tiles so both TensorCores on a v7x chip get work.
        half = _round_up((B + 1) // 2, 128)
        return half, 2
    return _round_up(B, 8), 1               # single sublane-aligned tile


def logistic_regression_nn(x, params, *, target_tile_bytes=8 * 1024 * 1024):
    """x: (B, input_dim) float32.
    params: {'w': (1, input_dim), 'b': (1,)} in PyTorch nn.Linear convention."""
    B, D = x.shape
    x = x.astype(jnp.float32)
    w = params["w"].reshape(1, D).astype(jnp.float32)   # native layout, no transpose
    b = params["b"].reshape(1, 1).astype(jnp.float32)

    TM, num_tiles = _select_tiles(B, D, target_tile_bytes)
    B_out = num_tiles * TM                  # over-allocated output (cheap); sliced below

    out = pl.pallas_call(
        _logreg_kernel,
        out_shape=jax.ShapeDtypeStruct((1, B_out), jnp.float32),
        grid=(num_tiles,),
        in_specs=[
            pl.BlockSpec((TM, D), lambda i: (i, 0)),   # streamed batch tile (tail clipped)
            pl.BlockSpec((1, D), lambda i: (0, 0)),    # resident weight
            pl.BlockSpec((1, 1), lambda i: (0, 0)),    # resident bias
        ],
        out_specs=pl.BlockSpec((1, TM), lambda i: (0, i)),  # lane-dense output
        compiler_params=pltpu.CompilerParams(
            dimension_semantics=("parallel",),
            # 2 x (<=8 MiB) x buffers + small out/w/b; safe on v7x's 64 MiB VMEM.
            vmem_limit_bytes=48 * 1024 * 1024,
        ),
        cost_estimate=pl.CostEstimate(
            flops=2 * B * D,
            transcendentals=B,
            bytes_accessed=(B * D + D + 1 + B) * 4,
        ),
    )(x, w, b)

    return out.reshape(B_out, 1)[:B]


def init_params(key, input_dim):
    """PyTorch nn.Linear default init (uniform +/- 1/sqrt(fan_in))."""
    kw, kb = jax.random.split(key)
    bound = 1.0 / jnp.sqrt(input_dim)
    w = jax.random.uniform(kw, (1, input_dim), jnp.float32, -bound, bound)
    b = jax.random.uniform(kb, (1,), jnp.float32, -bound, bound)
    return {"w": w, "b": b}


def _reference(x, p):
    return jax.nn.sigmoid(x @ p["w"].T + p["b"])


if __name__ == "__main__":
    key = jax.random.PRNGKey(0)
    k_x, k_p, k_x2, k_x3 = jax.random.split(key, 4)

    input_dim = 16
    params = init_params(k_p, input_dim)

    # 1) Small single-tile test.
    batch = 8
    x = jax.random.normal(k_x, (batch, input_dim), jnp.float32)
    out = jax.block_until_ready(logistic_regression_nn(x, params))
    ref = _reference(x, params)
    assert out.shape == (batch, 1), out.shape
    assert jnp.allclose(out, ref, atol=1e-5, rtol=1e-5)

    # 2) Multi-tile test with a clipped tail block (small tile budget forces a grid).
    batch2 = 600
    x2 = jax.random.normal(k_x2, (batch2, input_dim), jnp.float32)
    out2 = jax.block_until_ready(
        logistic_regression_nn(x2, params, target_tile_bytes=128 * 1024)
    )
    ref2 = _reference(x2, params)
    assert out2.shape == (batch2, 1), out2.shape
    assert jnp.allclose(out2, ref2, atol=1e-5, rtol=1e-5)

    # 3) Two-tile split path (v7x dual-TensorCore friendly; still tiny data).
    batch3 = 4608
    x3 = jax.random.normal(k_x3, (batch3, input_dim), jnp.float32)
    out3 = jax.block_until_ready(logistic_regression_nn(x3, params))
    ref3 = _reference(x3, params)
    assert out3.shape == (batch3, 1), out3.shape
    assert jnp.allclose(out3, ref3, atol=1e-5, rtol=1e-5)

    print("KERNEL_OK")
</pallas_src>

<mosaic_0001>
module attributes {stable_mosaic.version = 11 : i64} {
  func.func @_logreg_kernel(%arg0: i32, %arg1: memref<8x16xf32, #tpu.memory_space<vmem>>, %arg2: memref<1x16xf32, #tpu.memory_space<vmem>>, %arg3: memref<1x1xf32, #tpu.memory_space<vmem>>, %arg4: memref<1x8xf32, #tpu.memory_space<vmem>>) attributes {dimension_semantics = [#tpu.dimension_semantics<parallel>], iteration_bounds = array<i64: 1>, scalar_prefetch = 0 : i64, scratch_operands = 0 : i64, tpu.core_type = #tpu.core_type<tc>, window_params = [{transform_indices = @transform_0, window_bounds = array<i64: 8, 16>}, {pipeline_mode = #tpu.pipeline_mode<synchronous>, transform_indices = @transform_1, window_bounds = array<i64: 1, 16>}, {pipeline_mode = #tpu.pipeline_mode<synchronous>, transform_indices = @transform_2, window_bounds = array<i64: 1, 1>}, {transform_indices = @transform_3, window_bounds = array<i64: 1, 8>}]} {
    %c0 = arith.constant 0 : index
    %c0_0 = arith.constant 0 : index
    %0 = vector.load %arg1[%c0, %c0_0] : memref<8x16xf32, #tpu.memory_space<vmem>>, vector<8x16xf32>
    %c0_1 = arith.constant 0 : index
    %c0_2 = arith.constant 0 : index
    %1 = vector.load %arg2[%c0_1, %c0_2] : memref<1x16xf32, #tpu.memory_space<vmem>>, vector<1x16xf32>
    %cst = arith.constant dense<0.000000e+00> : vector<1x8xf32>
    %2 = tpu.matmul %1, %0, %cst {dimension_numbers = #tpu.dot_dimension_numbers<[1], [1], [0], [0], [0, 0, 1, 0], [], []>} : vector<1x16xf32>, vector<8x16xf32>, vector<1x8xf32> -> vector<1x8xf32>
    %c0_3 = arith.constant 0 : index
    %c0_4 = arith.constant 0 : index
    %3 = vector.load %arg3[%c0_3, %c0_4] : memref<1x1xf32, #tpu.memory_space<vmem>>, vector<1x1xf32>
    %4 = vector.broadcast %3 : vector<1x1xf32> to vector<1x8xf32>
    %5 = arith.addf %2, %4 : vector<1x8xf32>
    %6 = arith.negf %5 : vector<1x8xf32>
    %7 = math.exp %6 : vector<1x8xf32>
    %cst_5 = arith.constant 1.000000e+00 : f32
    %8 = vector.broadcast %cst_5 : f32 to vector<1x8xf32>
    %9 = arith.addf %8, %7 : vector<1x8xf32>
    %10 = arith.divf %8, %9 : vector<1x8xf32>
    %c0_6 = arith.constant 0 : index
    %c0_7 = arith.constant 0 : index
    %11 = vector.load %arg4[%c0_6, %c0_7] : memref<1x8xf32, #tpu.memory_space<vmem>>, vector<1x8xf32>
    tpu.vector_store %arg4[%c0_6, %c0_7], %10 {strides = array<i32>} : memref<1x8xf32, #tpu.memory_space<vmem>>, vector<1x8xf32>,
    return
  }
  func.func @transform_0(%arg0: i32) -> (i32, i32) {
    %c0_i32 = arith.constant 0 : i32
    %c0_i32_0 = arith.constant 0 : i32
    return %arg0, %c0_i32 : i32, i32
  }
  func.func @transform_1(%arg0: i32) -> (i32, i32) {
    %c0_i32 = arith.constant 0 : i32
    %c0_i32_0 = arith.constant 0 : i32
    %c0_i32_1 = arith.constant 0 : i32
    return %c0_i32, %c0_i32_0 : i32, i32
  }
  func.func @transform_2(%arg0: i32) -> (i32, i32) {
    %c0_i32 = arith.constant 0 : i32
    %c0_i32_0 = arith.constant 0 : i32
    %c0_i32_1 = arith.constant 0 : i32
    return %c0_i32, %c0_i32_0 : i32, i32
  }
  func.func @transform_3(%arg0: i32) -> (i32, i32) {
    %c0_i32 = arith.constant 0 : i32
    %c0_i32_0 = arith.constant 0 : i32
    return %c0_i32, %arg0 : i32, i32
  }
}

</mosaic_0001>

<bundles_post_ra>
// kernel: tpu_custom_call.1
= control target key start
LH: loop header
LB: loop body
LE: loop exit
PB: predicated region body
PF: predicated region fallthrough
CT: control target
= control target key end

     0   :  { %s264_s0 = inlined_call_operand.hbm [shape: f32[8,16], index: 0, kind: input, shape index: {}]   ;;  %s265_s1 = inlined_call_operand.vmem [shape: f32[1,16], index: 1, kind: input, shape index: {}]   ;;  %s266_s2 = inlined_call_operand.<no memory space> [shape: f32[1,1], index: 2, kind: input, shape index: {}]   ;;  %s267_s3 = inlined_call_operand.hbm [shape: f32[1,8], index: 3, kind: output, shape index: {}]  }
   0x1   :  { %v8_v0 = vstv %s266_s2 }
   0x2   :  { %9 = vst [vmem:[#allocation2] sm:$0x1] %v8_v0 }
   0x3   :  { %10 = vsyncpa [#allocation4], 0 }
   0x4   :  { %11 = vsyncpa [#allocation5], 0  ;;  %s209_s14 = smov [#allocation3]   ;;  %s161_s18 = scalar_lea.hbm %s264_s0, 128 }
   0x5   :  { %s18_s15 = sshll.u32 %s209_s14, 4  ;;  %p162_p0 = scmp.ne.s32.totalorder %s264_s0, %s161_s18  ;;  %s19_s15 = int_to_ptr.vmem [resolvable:$true] %s18_s15 }
   0x6   :  { %p165_p1 = scmp.lt.u32.totalorder %s161_s18, %s264_s0 }
   0x8   :  { %p167_p2 = pnand %p165_p1, %p162_p0 }
   0xa   :  { %170 = shalt.err (!%p167_p2)
}
   0xb   :  { %s171_s2 = scalar_lea.vmem %s19_s15, 128  ;;  %p176_p4 = scmp.lt.s32.totalorder %s19_s15, %s19_s15 }
   0xc   :  { %p172_p3 = scmp.ne.s32.totalorder %s19_s15, %s171_s2  ;;  %p177_p5 = scmp.lt.s32.totalorder %s171_s2, %s171_s2 }
   0xe   :  { %p178_p6 = por %p177_p5, %p176_p4 }
  0x10   :  { %p179_p7 = pnand %p178_p6, %p172_p3 }
  0x12   :  { %182 = shalt.err (!%p179_p7)
}
  0x13   :  { %21 = dma.hbm_to_vmem [thread:$0]  %s264_s0, 128, %s19_s15, [#allocation4]  }
  0x14   :  { %205 = dma.done.wait [#allocation4], 128  }
  0x15   :  { %206 = vsyncadd [#allocation4], 4294967168  ;;  %v210_v1 = vmov 0.0   ;;  %vm211_vm0 = vmmov 0   ;;  %v212_v2 = vmov 0   ;;  %vm41_vm1 = vcmask 130048  }
  0x16   :  { %146 = vmatprep.subr.mxu0 %v210_v1  ;;  %148 = vmatprep.mubr.msk.f32.mxu0 %vm211_vm0, %v210_v1  ;;  %v29_v3 = vld [vmem:[#allocation3] sm:$0xff]  ;;  %v31_v4 = vld [vmem:[#allocation2] sm:$0x1]  ;;  %v37_v6 = vlaneseq  ;;  %s213_s0 = smov [#allocation6]   ;;  %vm124_vm2 = vcmask 57344  }
  0x17   :  { %156 = vset.pattern.permute.xlu0 %v212_v2  ;;  %147 = vmatpush3.xpose.msk.msra.mxu0 %vm41_vm1, %v29_v3  ;;  %v30_v5 = vld [vmem:[%s265_s1] sm:$0x1]  ;;  %s132_s27 = sshll.u32 %s213_s0, 4  ;;  %s133_s27 = int_to_ptr.vmem [resolvable:$true] %s132_s27 }
  0x18   :  { %34 = vperm.xlu0 %156, %v31_v4   ;;  %v38_v7 = vshrl.u32 %v37_v6, 7  ;;  %s183_s1 = scalar_lea.vmem %s133_s27, 16  ;;  %s187_s28 = scalar_lea.vmem %s133_s27, 32 }
  0x19   :  { %p184_p8 = scmp.ne.s32.totalorder %s133_s27, %s183_s1  ;;  %p188_p9 = scmp.lt.s32.totalorder %s133_s27, %s133_s27 }
  0x1a   :  { %149 = vmatmul.mubr.msk.f32.vlgmr.msra.gmra.mrb[0].mxu0 %vm41_vm1, %v30_v5  ;;  %v39_v8 = vsub.s32 0, %v38_v7  ;;  %p189_p10 = scmp.lt.s32.totalorder %s187_s28, %s183_s1 }
  0x1c   :  { %p190_p11 = por %p189_p10, %p188_p9 }
  0x1e   :  { %p191_p12 = pnand %p190_p11, %p184_p8 }
  0x97   :  { %v35_v9 = vpop.permute.xlu0 %34 }
  0x98   :  { %v40_v10 = vrot.slane %v35_v9, %v39_v8 }
  0xed   :  { %v114_v11 = vpop.f32.mrb[0].mxu0 }
  0xee   :  { %v115_v12 = vadd.f32 %v114_v11, %v40_v10  ;;  %v150_v13 = vpop.f32.mrb[1].mxu0 }
  0xf0   :  { %v143_v14 = vmul.f32 -1.442695, %v115_v12 }
  0xf2   :  { %157 = vpow2.f32 %v143_v14 }
  0xfc   :  { %v158_v15 = vpop.eup %157 }
  0xfd   :  { %v121_v16 = vadd.f32 1.0, %v158_v15 }
  0xff   :  { %159 = vrcp.f32 %v121_v16 }
 0x109   :  { %v160_v17 = vpop.eup %159 }
 0x10a   :  { %125 = vst.msk [vmem:[#allocation6] sm:$0x1] %vm124_vm2, %v160_v17 }
 0x10b   :  { %194 = shalt.err (!%p191_p12)
}
 0x10c   :  { %s195_s4 = scalar_lea.hbm %s267_s3, 16 }
 0x10d   :  { %p196_p13 = scmp.ne.s32.totalorder %s267_s3, %s195_s4  ;;  %p199_p0 = scmp.lt.u32.totalorder %s195_s4, %s267_s3 }
 0x10f   :  { %p201_p1 = pnand %p199_p0, %p196_p13 }
 0x111   :  { %204 = shalt.err (!%p201_p1)
}
 0x112   :  { %135 = dma.vmem_to_hbm [thread:$0]  %s133_s27, 16, %s267_s3, [#allocation5]  }
 0x113   :  { %207 = dma.done.wait [#allocation5], 16  }
 0x114   :  { %208 = vsyncadd [#allocation5], 4294967280 }
 0x115   :  { %139 = vsyncpa [#allocation4], 1 }
 0x116   :  { %140 = vsyncpa [#allocation5], 1 }

</bundles_post_ra>
